<compile_context>
chip_gen: v6e
topology: v6e:2x2x1
jax: 0.10.0
libtpu: 0.0.40
codegen_flags: <defaults>
</compile_context>

<pallas_src>
import jax
import jax.numpy as jnp
from jax.experimental import pallas as pl
from jax.experimental.pallas import tpu as pltpu


# ----------------------------------------------------------------------------
# Pallas kernel: numerically-stable softmax over the channel axis.
# Each grid step processes a (tN, C, tHW) block; C is always the full channel
# extent so the reduction is complete within the block.
# ----------------------------------------------------------------------------
def _channel_softmax_kernel(x_ref, o_ref):
    x = x_ref[...].astype(jnp.float32)                  # (tN, C, tHW)
    m = jnp.max(x, axis=1, keepdims=True)               # (tN, 1, tHW)
    e = jnp.exp(x - m)                                  # (tN, C, tHW)
    s = jnp.sum(e, axis=1, keepdims=True)               # (tN, 1, tHW)
    # Exact divide: the kernel is firmly memory-bound, so the divide is hidden
    # under DMA and softmax rows sum to 1 to f32 precision.
    o_ref[...] = (e / s).astype(o_ref.dtype)


def _round_up(x, m):
    return (x + m - 1) // m * m


# Total per-grid-step VMEM working-set budget (double-buffered input + output
# plus the f32 intermediates).  24 MiB leaves ample headroom against v7x's
# 64 MiB per-TC VMEM while still amortising the ~0.35 us/step grid overhead on
# v5e/v6e (128 MiB VMEM).
_TARGET_VMEM_BYTES = 24 * 1024 * 1024
_VMEM_LIMIT_CAP = 48 * 1024 * 1024


def channel_softmax(x, *, target_vmem_bytes=_TARGET_VMEM_BYTES):
    """softmax(x, dim=1) for NCHW x, computed in a Pallas TPU kernel."""
    N, C, H, W = x.shape
    HW = H * W
    xr = x.reshape(N, C, HW)

    elem_bytes = x.dtype.itemsize
    # Physical (sublane-padded) channel extents: f32 tiles pad C to 8,
    # bf16 to 16, int8/fp8 to 32.
    c_f32 = _round_up(C, 8)
    c_phys = _round_up(C, 8 * max(1, 4 // elem_bytes))
    # Per lane-column VMEM bytes of one grid step:
    #   2x double-buffered input + 2x double-buffered output + 2 f32 temps.
    col_bytes = 2 * c_phys * elem_bytes + 2 * c_phys * elem_bytes + 2 * c_f32 * 4

    # ---- lane (H*W) tiling --------------------------------------------------
    t_hw_max = max(128, (target_vmem_bytes // col_bytes) // 128 * 128)
    if HW <= t_hw_max:
        # Whole spatial extent in one lane tile.  t_hw == HW is legal even if
        # HW is not a multiple of 128 (block dim equals full array dim), so no
        # pad/slice round trip through HBM is ever needed.
        t_hw = HW
    else:
        # Multiple-of-128 tile with a ragged last block; sweep candidates to
        # minimise the last-block overshoot (e.g. 224*224 with C=64 lands on
        # an exact division instead of ~14% waste).
        best_t = t_hw_max
        best_total = pl.cdiv(HW, best_t) * best_t
        t = t_hw_max
        lo = max(128, t_hw_max // 2)
        while t >= lo and best_total != HW:
            total = pl.cdiv(HW, t) * t
            if total < best_total:
                best_t, best_total = t, total
            t -= 128
        t_hw = best_t

    # ---- batch tiling --------------------------------------------------------
    if t_hw >= HW:
        max_n = max(1, target_vmem_bytes // (col_bytes * t_hw))
        t_n = min(N, max_n)              # cdiv grid -> ragged last batch block
    else:
        t_n = 1

    # v7x has two TensorCores: never leave the grid at a single block when the
    # tensor can be split along a parallel axis (harmless on v5e/v6e).
    if pl.cdiv(N, t_n) * pl.cdiv(HW, t_hw) == 1:
        if N >= 2:
            t_n = pl.cdiv(N, 2)
        elif HW >= 256:
            t_hw = _round_up(pl.cdiv(HW, 2), 128)

    grid = (pl.cdiv(N, t_n), pl.cdiv(HW, t_hw))

    block_bytes = col_bytes * t_hw * t_n
    vmem_limit = min(max(int(block_bytes * 3 // 2), 16 * 1024 * 1024),
                     _VMEM_LIMIT_CAP)

    out = pl.pallas_call(
        _channel_softmax_kernel,
        out_shape=jax.ShapeDtypeStruct((N, C, HW), x.dtype),
        grid=grid,
        in_specs=[pl.BlockSpec((t_n, C, t_hw), lambda i, j: (i, 0, j))],
        out_specs=pl.BlockSpec((t_n, C, t_hw), lambda i, j: (i, 0, j)),
        compiler_params=pltpu.CompilerParams(
            dimension_semantics=("parallel", "parallel"),
            vmem_limit_bytes=vmem_limit,
        ),
    )(xr)

    return out.reshape(N, C, H, W)


# ----------------------------------------------------------------------------
# VGGBlock module equivalent.
# ----------------------------------------------------------------------------
def init_vgg_block_params(key, in_channels, out_channels):
    """The PyTorch module builds 16 Conv2d(3x3, pad=1) layers in __init__, but
    they are dead code in forward() (self.linear is None because of the
    in_channels reassignment in the loop).  Kept only for parity/debugging;
    NOT used on the hot path."""
    params = []
    ic = in_channels
    for _ in range(16):
        kw, kb, key = jax.random.split(key, 3)
        w = jax.random.normal(kw, (out_channels, ic, 3, 3), jnp.float32) * 0.05
        b = jax.random.normal(kb, (out_channels,), jnp.float32) * 0.01
        params.append({"weight": w, "bias": b})
        ic = out_channels
    return params


def vgg_block_forward(x, params=None):
    # self.linear is None (see note at top) -> only softmax over dim=1 runs.
    del params
    return channel_softmax(x)


# ----------------------------------------------------------------------------
if __name__ == "__main__":
    key = jax.random.PRNGKey(0)
    kx, kx2 = jax.random.split(key)

    # Primary shape (NCHW, consistent with the Conv2d-style input).
    N, C, H, W = 2, 4, 16, 16
    x = jax.random.normal(kx, (N, C, H, W), jnp.float32)

    y = jax.block_until_ready(vgg_block_forward(x))

    y_ref = jax.nn.softmax(x, axis=1)
    assert y.shape == x.shape
    assert jnp.allclose(y, y_ref, atol=1e-5, rtol=1e-5)
    assert jnp.allclose(jnp.sum(y, axis=1), jnp.ones((N, H, W)), atol=1e-5)

    # Secondary check: odd batch + non-128-multiple spatial extent exercises
    # the ragged batch / whole-HW-tile paths (no pad, no output slice).
    x2 = jax.random.normal(kx2, (3, 4, 9, 9), jnp.float32)
    y2 = jax.block_until_ready(channel_softmax(x2))
    assert jnp.allclose(y2, jax.nn.softmax(x2, axis=1), atol=1e-5, rtol=1e-5)

    print("KERNEL_OK")
</pallas_src>

<mosaic_0001>
module attributes {stable_mosaic.version = 11 : i64} {
  func.func @_channel_softmax_kernel(%arg0: i32, %arg1: i32, %arg2: memref<1x4x256xf32, #tpu.memory_space<vmem>>, %arg3: memref<1x4x256xf32, #tpu.memory_space<vmem>>) attributes {dimension_semantics = [#tpu.dimension_semantics<parallel>, #tpu.dimension_semantics<parallel>], iteration_bounds = array<i64: 2, 1>, scalar_prefetch = 0 : i64, scratch_operands = 0 : i64, tpu.core_type = #tpu.core_type<tc>, window_params = [{transform_indices = @transform_0, window_bounds = array<i64: 1, 4, 256>}, {transform_indices = @transform_1, window_bounds = array<i64: 1, 4, 256>}]} {
    %c0 = arith.constant 0 : index
    %c0_0 = arith.constant 0 : index
    %c0_1 = arith.constant 0 : index
    %0 = vector.load %arg2[%c0, %c0_0, %c0_1] : memref<1x4x256xf32, #tpu.memory_space<vmem>>, vector<1x4x256xf32>
    %cst = arith.constant dense<0xFF800000> : vector<1x256xf32>
    %1 = vector.multi_reduction <maximumf>, %0, %cst [1] : vector<1x4x256xf32> to vector<1x256xf32>
    %2 = vector.shape_cast %1 : vector<1x256xf32> to vector<1x1x256xf32>
    %3 = vector.broadcast %2 : vector<1x1x256xf32> to vector<1x4x256xf32>
    %4 = arith.subf %0, %3 : vector<1x4x256xf32>
    %5 = math.exp %4 : vector<1x4x256xf32>
    %cst_2 = arith.constant dense<0.000000e+00> : vector<1x256xf32>
    %6 = vector.multi_reduction <add>, %5, %cst_2 [1] : vector<1x4x256xf32> to vector<1x256xf32>
    %7 = vector.shape_cast %6 : vector<1x256xf32> to vector<1x1x256xf32>
    %8 = vector.broadcast %7 : vector<1x1x256xf32> to vector<1x4x256xf32>
    %9 = arith.divf %5, %8 : vector<1x4x256xf32>
    %c0_3 = arith.constant 0 : index
    %c0_4 = arith.constant 0 : index
    %c0_5 = arith.constant 0 : index
    %10 = vector.load %arg3[%c0_3, %c0_4, %c0_5] : memref<1x4x256xf32, #tpu.memory_space<vmem>>, vector<1x4x256xf32>
    tpu.vector_store %arg3[%c0_3, %c0_4, %c0_5], %9 {strides = array<i32>} : memref<1x4x256xf32, #tpu.memory_space<vmem>>, vector<1x4x256xf32>,
    return
  }
  func.func @transform_0(%arg0: i32, %arg1: i32) -> (i32, i32, i32) {
    %c0_i32 = arith.constant 0 : i32
    %c0_i32_0 = arith.constant 0 : i32
    return %arg0, %c0_i32, %arg1 : i32, i32, i32
  }
  func.func @transform_1(%arg0: i32, %arg1: i32) -> (i32, i32, i32) {
    %c0_i32 = arith.constant 0 : i32
    %c0_i32_0 = arith.constant 0 : i32
    return %arg0, %c0_i32, %arg1 : i32, i32, i32
  }
}

</mosaic_0001>

<bundles_post_ra>
// kernel: tpu_custom_call.1
= control target key start
LH: loop header
LB: loop body
LE: loop exit
PB: predicated region body
PF: predicated region fallthrough
CT: control target
= control target key end

     0   :  { %6 = vsyncpa [#allocation3], 0  ;;  %s652_s0 = inlined_call_operand.hbm [shape: f32[2,4,256], index: 0, kind: input, shape index: {}]   ;;  %s653_s1 = inlined_call_operand.hbm [shape: f32[2,4,256], index: 1, kind: output, shape index: {}]  }
   0x1   :  { %8 = vsyncpa [#allocation3 + $0x1], 0 }
   0x2   :  { %9 = vsyncpa [#allocation4], 0 }
   0x3   :  { %11 = vsyncpa [#allocation4 + $0x1], 0  ;;  %s510_s6 = smov 0   ;;  %s512_s7 = smov 0  }
   0x4   :  { %s514_s8 = smov 0   ;;  %s516_s9 = smov 0  }
   0x5   :  { %s518_s10 = smov 0   ;;  %s520_s11 = smov 0  }
   0x6 LB: > { %s304_s12 = sadd.s32 4294967295, %s496_s11   ;;  %s305_s13 = sadd.s32 4294967294, %s496_s11   ;;  %s496_s11 = sphi %s520_s11, %s17_s11   ;;  %s492_s10 = sphi %s518_s10, %s665_s10   ;;  %s488_s9 = sphi %s516_s9, %s664_s9   ;;  %s484_s8 = sphi %s514_s8, %s663_s8   ;;  %s480_s7 = sphi %s512_s7, %s662_s7   ;;  %s476_s6 = sphi %s510_s6, %s661_s6  }
   0x7   : > { %s29_s14 = sadd.s32 1, %s492_s10  ;;  %s38_s15 = sadd.s32 1, %s484_s8 }
   0x8   : > { %p31_p0 = scmp.ge.s32.totalorder %s29_s14, 2  ;;  %p45_p1 = scmp.ne.s32.totalorder %s484_s8, %s480_s7 }
   0x9   : > { %p46_p2 = scmp.eq.s32.totalorder %s496_s11, 0  ;;  %p51_p3 = scmp.ne.s32.totalorder %s480_s7, %s476_s6 }
   0xa   : > { %s667_s14 = smov (%p31_p0, %s29_s14), 0  ;;  %p52_p5 = scmp.eq.s32.totalorder %s304_s12, 0 }
   0xb   : > { %p551_p4 = por %p46_p2, %p45_p1  ;;  %s33_s17 = ssub.s32 %s492_s10, %s667_s14 }
   0xc   : > { %p77_p6 = scmp.eq.s32.totalorder %s304_s12, 1  ;;  %p36_p7 = scmp.eq.s32.totalorder %s33_s17, 0 }
   0xd   : > { %p557_p8 = por %p52_p5, %p51_p3  ;;  %p83_p10 = scmp.eq.s32.totalorder %s305_s13, 1 }
   0xe   : > { %p561_p9 = por %p77_p6, %p45_p1  ;;  %p333_p13 = scmp.lt.s32.totalorder %s496_s11, 2 }
   0xf   : > { %s566_s20 = scalar_select %p36_p7, %s484_s8, %s38_s15  }
  0x10   : > { %p568_p11 = por %p83_p10, %p51_p3  ;;  %s103_s22 = sand.u32 1, %s484_s8  }
  0x11   : > { %s308_s23 = sshll.u32 %s103_s22, 3  ;;  %s319_s24 = sshll.u32 %s492_s10, 7 }
  0x12   : > { %s657_s21 = scalar_select %p568_p11, 1, 0 }
  0x13   : > { %s115_s27 = scalar_lea.hbm %s652_s0, %s319_s24  ;;  %s107_s28 = scalar_lea.vmem [#allocation2], %s308_s23 }
  0x14   : > { %s117_s29 = sshll.u32 %s107_s28, 4  ;;  %p581_p0 = pnand %p333_p13, %p551_p4  ;;  %s118_s29 = int_to_ptr.vmem [resolvable:$true] %s117_s29 }
  0x15   : > { %p311_p1 = scmp.ge.s32.totalorder %s496_s11, 1  ;;  %p122_p2 = scmp.lt.s32.totalorder %s496_s11, 3 }
  0x16   : > { %s104_s2 = scalar_lea.sflag [#allocation3], %s103_s22  ;;  %p390_p3 = pneg %p581_p0 }
  0x17   : > { %s401_s3 = scalar_lea.vmem %s118_s29, 128  ;;  %s498_s4 = smov [#allocation2]  }
  0x18   : > { %p402_p5 = scmp.ne.s32.totalorder %s118_s29, %s401_s3  ;;  %s406_s5 = sshll.u32 %s498_s4, 4  ;;  %s407_s5 = int_to_ptr.vmem [resolvable:$false] %s406_s5 }
  0x19   : > { %s408_s12 = scalar_lea.vmem %s407_s5, 256  ;;  %p409_p10 = scmp.lt.s32.totalorder %s118_s29, %s407_s5 }
  0x1a   : > { %p404_p6 = pnand %p402_p5, %p390_p3  ;;  %p410_p12 = scmp.lt.s32.totalorder %s408_s12, %s401_s3 }
  0x1c   : > { %p405_p7 = pneg %p404_p6  ;;  %p411_p4 = por %p410_p12, %p409_p10 }
  0x1e   : > { %p412_p13 = pnand %p411_p4, %p405_p7 }
  0x20   : > { %415 = shalt.err (!%p412_p13)
}
  0x21   : > { %328 = dma.hbm_to_vmem [thread:$0]  (!%p581_p0), %s115_s27, 128, %s118_s29, %s104_s2  }
  0x22   : > { %p123_p11 = pnand %p311_p1, %p122_p2 }
  0x23   : > { %s596_s13 = sand.u32 (!%p123_p11), 1, %s480_s7  }
  0x24   : > { %126 = sbr.rel (%p123_p11) target bundleno = 124 (0x7c), region = 24  ;;  %s312_s15 = sshll.u32 (!%p123_p11), %s596_s13, 3 }
  0x25   : > { %s129_s16 = scalar_lea.sflag (!%p123_p11), [#allocation3], %s596_s13  ;;  %s132_s17 = scalar_lea.vmem (!%p123_p11), [#allocation2], %s312_s15 }
  0x29   : > { %467 = dma.done.wait (%p557_p8), %s129_s16, 128  }
  0x2a   : > { %469 = vsyncadd (%p557_p8), %s129_s16, 4294967168  ;;  %vm157_vm0 = vcmask 1043456   ;;  %v153_v0 = vld [vmem:[%s132_s17] sm:$0xff]  ;;  %s150_s18 = scalar_lea.vmem [#allocation5], %s312_s15  ;;  %s320_s23 = sshll.u32 %s488_s9, 7 }
  0x2b   : > { %v155_v1 = vcombine.high %v153_v0, %v153_v0  ;;  %v158_v2 = vsel %vm157_vm0, %v153_v0, -inf  ;;  %s220_s22 = sshll.u32 %s150_s18, 4  ;;  %s218_s26 = scalar_lea.hbm %s653_s1, %s320_s23  ;;  %s221_s22 = int_to_ptr.vmem [resolvable:$true] %s220_s22 }
  0x2c   : > { %v159_v3 = vrot.slane %v158_v2, 4  ;;  %s204_s27 = scalar_lea.sflag [#allocation4], %s596_s13  ;;  %s416_s28 = scalar_lea.vmem %s221_s22, 128 }
  0x2d   : > { %v165_v4 = vsel %vm157_vm0, %v155_v1, -inf  ;;  %p417_p8 = scmp.ne.s32.totalorder %s221_s22, %s416_s28  ;;  %s499_s29 = smov [#allocation5]  }
  0x2e   : > { %v160_v5 = vmax.f32 %v158_v2, %v159_v3  ;;  %v166_v6 = vrot.slane %v165_v4, 4  ;;  %s420_s30 = sshll.u32 %s499_s29, 4  ;;  %s421_s30 = int_to_ptr.vmem [resolvable:$false] %s420_s30 }
  0x2f   : > { %p418_p11 = pnand %p417_p8, %p561_p9  ;;  %s422_s2 = scalar_lea.vmem %s421_s30, 256 }
  0x30   : > { %v161_v7 = vrot.slane %v160_v5, 2  ;;  %v167_v8 = vmax.f32 %v165_v4, %v166_v6  ;;  %p423_p0 = scmp.lt.s32.totalorder %s221_s22, %s421_s30  ;;  %p424_p1 = scmp.lt.s32.totalorder %s422_s2, %s416_s28 }
  0x31   : > { %p419_p12 = pneg %p418_p11 }
  0x32   : > { %v162_v9 = vmax.f32 %v160_v5, %v161_v7  ;;  %v168_v10 = vrot.slane %v167_v8, 2  ;;  %p425_p2 = por %p424_p1, %p423_p0 }
  0x34   : > { %v163_v11 = vrot.slane %v162_v9, 1  ;;  %v169_v12 = vmax.f32 %v167_v8, %v168_v10  ;;  %p426_p3 = pnand %p425_p2, %p419_p12 }
  0x36   : > { %v164_v13 = vmax.f32 %v162_v9, %v163_v11  ;;  %v170_v14 = vrot.slane %v169_v12, 1 }
  0x38   : > { %v171_v15 = vmax.f32 %v169_v12, %v170_v14 }
  0x3a   : > { %v174_v16 = vcombine.low %v164_v13, %v171_v15 }
  0x3c   : > { %v176_v17 = vsub.f32 %v153_v0, %v174_v16 }
  0x3e   : > { %v177_v18 = vmul.f32 1.442695, %v176_v17 }
  0x40   : > { %384 = vpow2.f32 %v177_v18 }
  0x4d   : > { %v385_v19 = vpop.eup %384 }
  0x4e   : > { %v180_v20 = vcombine.high %v385_v19, %v385_v19  ;;  %v182_v21 = vsel %vm157_vm0, %v385_v19, 0.0 }
  0x4f   : > { %v183_v22 = vrot.slane %v182_v21, 4 }
  0x50   : > { %v189_v23 = vsel %vm157_vm0, %v180_v20, 0.0 }
  0x51   : > { %v184_v24 = vadd.f32 %v183_v22, %v182_v21  ;;  %v190_v25 = vrot.slane %v189_v23, 4 }
  0x53   : > { %v185_v26 = vrot.slane %v184_v24, 2  ;;  %v191_v27 = vadd.f32 %v190_v25, %v189_v23 }
  0x55   : > { %v186_v28 = vadd.f32 %v185_v26, %v184_v24  ;;  %v192_v29 = vrot.slane %v191_v27, 2 }
  0x57   : > { %v187_v30 = vrot.slane %v186_v28, 1  ;;  %v193_v31 = vadd.f32 %v192_v29, %v191_v27 }
  0x59   : > { %v188_v32 = vadd.f32 %v187_v30, %v186_v28  ;;  %v194_v33 = vrot.slane %v193_v31, 1 }
  0x5b   : > { %v195_v34 = vadd.f32 %v194_v33, %v193_v31 }
  0x5d   : > { %v198_v35 = vcombine.low %v188_v32, %v195_v34 }
  0x5f   : > { %386 = vrcp.f32 %v198_v35 }
  0x6c   : > { %v387_v36 = vpop.eup %386 }
  0x6d   : > { %v201_v37 = vmul.f32 %v387_v36, %v385_v19 }
  0x6f   : > { %202 = vst [vmem:[%s150_s18] sm:$0xff] %v201_v37 }
  0x70   : > { %429 = shalt.err (!%p426_p3)
}
  0x71   : > { %s430_s9 = scalar_lea.hbm %s218_s26, 128  ;;  %s434_s5 = scalar_lea.hbm %s653_s1, 256 }
  0x72   : > { %p431_p5 = scmp.ne.s32.totalorder %s218_s26, %s430_s9  ;;  %p435_p10 = scmp.lt.s32.totalorder %s218_s26, %s653_s1 }
  0x73   : > { %p436_p4 = scmp.lt.s32.totalorder %s434_s5, %s430_s9 }
  0x74   : > { %p432_p6 = pnand %p431_p5, %p561_p9 }
  0x75   : > { %p437_p13 = por %p436_p4, %p435_p10 }
  0x76   : > { %p433_p7 = pneg %p432_p6 }
  0x78   : > { %p438_p8 = pnand %p437_p13, %p433_p7 }
  0x7a   : > { %441 = shalt.err (!%p438_p8)
}
  0x7b   : > { %323 = dma.vmem_to_hbm [thread:$0]  (%p561_p9), %s221_s22, 128, %s218_s26, %s204_s27  }
  0x7c PF: > { %s232_s15 = sand.u32 1, %s476_s6   ;;  %p659_p11 = scmp.ne.s32.totalorder %s657_s21, 0 }
  0x7d   : > { %p660_p12 = scmp.ge.s32.totalorder %s496_s11, 2  ;;  %s233_s16 = scalar_lea.sflag [#allocation4], %s232_s15 }
  0x7f   : > { %p330_p0 = pnand %p660_p12, %p659_p11 }
  0x81   : > { %p331_p1 = pneg %p330_p0 }
  0x83   : > { %471 = dma.done.wait (%p331_p1), %s233_s16, 128  }
  0x84   : > { %473 = vsyncadd (%p331_p1), %s233_s16, 4294967168  ;;  %s17_s11 = sadd.s32 1, %s496_s11   ;;  %s661_s6 = smov %s480_s7 }
  0x85   : > { %p14_p2 = scmp.ge.s32.totalorder %s17_s11, 4   ;;  %s662_s7 = smov %s484_s8 }
  0x86   : > { %s663_s8 = smov %s566_s20  ;;  %s664_s9 = smov %s492_s10 }
  0x87   : > { %s665_s10 = smov %s667_s14  ;;  %16 = sbr.rel (!%p14_p2) target bundleno = 6 (0x6), region = 69 }
  0x8c   :  { %238 = vsyncpa [#allocation3], 1 }
  0x8d   :  { %240 = vsyncpa [#allocation3 + $0x1], 1 }
  0x8e   :  { %241 = vsyncpa [#allocation4], 1 }
  0x8f   :  { %243 = vsyncpa [#allocation4 + $0x1], 1 }

</bundles_post_ra>
